<compile_context>
chip_gen: v7x
topology: tpu7x:2x2x1
jax: 0.10.0
libtpu: 0.0.40
codegen_flags: <defaults>
</compile_context>

<pallas_src>
import functools
import math

import jax
import jax.numpy as jnp
from jax.experimental import pallas as pl
from jax.experimental.pallas import tpu as pltpu


def _src_loss_kernel(labels_ref, ds_ref, xs_ref, s_ref, out_ref, *, dict_num, eps):
    """Per-column SRC cross-entropy loss for one N tile (class loop unrolled)."""
    C = dict_num
    s = s_ref[...].astype(jnp.float32)                         # [F, T]

    # ---- per-class reconstruction residuals, kept in registers ----
    resids = []                                                # each [1, T] f32
    for c in range(C):
        recon = jnp.dot(ds_ref[c], xs_ref[c],
                        preferred_element_type=jnp.float32)    # [F, T] on the MXU
        r = recon - s
        resids.append(jnp.sum(r * r, axis=0, keepdims=True))   # squared L2 over F

    r_sum = resids[0]
    for c in range(1, C):
        r_sum = r_sum + resids[c]                              # [1, T]

    inv_rsum = pl.reciprocal(jnp.maximum(r_sum, eps), approx=True)
    pseus = [(r_sum - rc) * inv_rsum for rc in resids]         # [1, T] each

    # softmax over the class axis (done over the unrolled list -> VPU/EUP only)
    m = pseus[0]
    for c in range(1, C):
        m = jnp.maximum(m, pseus[c])
    exps = [jnp.exp(p - m) for p in pseus]
    denom = exps[0]
    for c in range(1, C):
        denom = denom + exps[c]
    inv_denom = pl.reciprocal(denom, approx=True)
    probs = [e * inv_denom for e in exps]                      # [1, T] each, in (0, 1]

    # CrossEntropy(prob.T, labels): logsumexp_c prob[c, n] - prob[label_n, n].
    # prob in (0, 1] so the un-shifted logsumexp is numerically safe.
    sum_exp = jnp.exp(probs[0])
    for c in range(1, C):
        sum_exp = sum_exp + jnp.exp(probs[c])
    lse = jnp.log(sum_exp)                                     # [1, T]

    labels = labels_ref[...]                                   # [1, T] int32
    picked = jnp.zeros_like(lse)
    for c in range(C):
        picked = picked + jnp.where(labels == c, probs[c], 0.0)

    out_ref[...] = lse - picked                                # lane-dense per-column loss


def concatenated_dictionary_src_loss(labels, Ds, X_cat, S, *, dict_size, dict_num,
                                     eps=1e-8, max_tile_n=512):
    """Pallas wrapper.  Ds: [C,F,K], X_cat: [1, C*K, N], S: [F,N], labels: [N]."""
    C, F, K = Ds.shape
    assert C == dict_num and K == dict_size
    N = S.shape[-1]

    Xs = X_cat.reshape(dict_num, dict_size, N)        # reshape only, no dtype copy
    labels2d = labels.reshape(1, N).astype(jnp.int32)

    # ---- N tiling on the lane axis ----
    if N <= max_tile_n:
        tile_n, n_pad = N, N                          # single full-extent tile
    else:
        tile_n = max_tile_n                           # multiple of 128
        n_pad = math.ceil(N / tile_n) * tile_n
        pad = n_pad - N
        if pad:
            Xs = jnp.pad(Xs, ((0, 0), (0, 0), (0, pad)))
            S = jnp.pad(S, ((0, 0), (0, pad)))
            labels2d = jnp.pad(labels2d, ((0, 0), (0, pad)))
    num_tiles = n_pad // tile_n

    per_col = pl.pallas_call(
        functools.partial(_src_loss_kernel, dict_num=dict_num, eps=eps),
        out_shape=jax.ShapeDtypeStruct((1, n_pad), jnp.float32),
        grid_spec=pltpu.PrefetchScalarGridSpec(
            num_scalar_prefetch=0,
            grid=(num_tiles,),
            in_specs=[
                pl.BlockSpec((1, tile_n), lambda t: (0, t)),        # labels  [1, N]
                pl.BlockSpec((C, F, K), lambda t: (0, 0, 0)),       # Ds, resident across tiles
                pl.BlockSpec((C, K, tile_n), lambda t: (0, 0, t)),  # Xs      [C, K, N]
                pl.BlockSpec((F, tile_n), lambda t: (0, t)),        # S       [F, N]
            ],
            out_specs=pl.BlockSpec((1, tile_n), lambda t: (0, t)),
        ),
        compiler_params=pltpu.CompilerParams(
            dimension_semantics=("parallel",),        # N tiles are independent
        ),
    )(labels2d, Ds, Xs, S)

    # Final mean over the true N columns (any padded tail columns are dropped here).
    return jnp.sum(per_col[0, :N]) / N


def _reference_loss(labels, Ds, X_cat, S, *, dict_size, dict_num, eps=1e-8):
    """Pure-JAX reference of the PyTorch forward."""
    Xs = X_cat.reshape(dict_num, dict_size, -1)
    recon = jnp.einsum("cfk,ckn->cfn", Ds, Xs)
    resid = recon - S[None]
    residuals = jnp.sum(resid * resid, axis=1)                  # [C, N]
    r_sum = residuals.sum(axis=0)
    pseu = (r_sum - residuals) / jnp.maximum(r_sum, eps)
    prob = jax.nn.softmax(pseu, axis=0)                          # [C, N]
    logp = jax.nn.log_softmax(prob.T, axis=-1)                   # [N, C]
    return -jnp.mean(logp[jnp.arange(labels.shape[0]), labels])


if __name__ == "__main__":
    key = jax.random.PRNGKey(0)

    # Test 1: small shapes, single full-extent N tile.
    dict_num, feat, dict_size, n_data = 4, 32, 16, 8
    k1, k2, k3, k4, k5 = jax.random.split(key, 5)
    Ds = jax.random.normal(k1, (dict_num, feat, dict_size), dtype=jnp.float32)
    X_cat = jax.random.normal(k2, (1, dict_num * dict_size, n_data), dtype=jnp.float32)
    S = jax.random.normal(k3, (feat, n_data), dtype=jnp.float32)
    labels = jax.random.randint(k4, (n_data,), 0, dict_num, dtype=jnp.int32)

    loss = concatenated_dictionary_src_loss(
        labels, Ds, X_cat, S, dict_size=dict_size, dict_num=dict_num, eps=1e-8
    )
    loss = jax.block_until_ready(loss)
    ref = _reference_loss(
        labels, Ds, X_cat, S, dict_size=dict_size, dict_num=dict_num, eps=1e-8
    )
    assert jnp.allclose(loss, ref, rtol=2e-3, atol=2e-3), (loss, ref)

    # Test 2: exercise the tiled-N path (3 tiles of 128, padded tail masked out).
    n_data2 = 300
    ka, kb, kc = jax.random.split(k5, 3)
    X_cat2 = jax.random.normal(ka, (1, dict_num * dict_size, n_data2), dtype=jnp.float32)
    S2 = jax.random.normal(kb, (feat, n_data2), dtype=jnp.float32)
    labels2 = jax.random.randint(kc, (n_data2,), 0, dict_num, dtype=jnp.int32)

    loss2 = concatenated_dictionary_src_loss(
        labels2, Ds, X_cat2, S2, dict_size=dict_size, dict_num=dict_num,
        eps=1e-8, max_tile_n=128,
    )
    loss2 = jax.block_until_ready(loss2)
    ref2 = _reference_loss(
        labels2, Ds, X_cat2, S2, dict_size=dict_size, dict_num=dict_num, eps=1e-8
    )
    assert jnp.allclose(loss2, ref2, rtol=2e-3, atol=2e-3), (loss2, ref2)

    print("KERNEL_OK")
</pallas_src>

<mosaic_0001>
module attributes {stable_mosaic.version = 11 : i64} {
  func.func @_src_loss_kernel(%arg0: i32, %arg1: memref<1x8xi32, #tpu.memory_space<vmem>>, %arg2: memref<4x32x16xf32, #tpu.memory_space<vmem>>, %arg3: memref<4x16x8xf32, #tpu.memory_space<vmem>>, %arg4: memref<32x8xf32, #tpu.memory_space<vmem>>, %arg5: memref<1x8xf32, #tpu.memory_space<vmem>>) attributes {dimension_semantics = [#tpu.dimension_semantics<parallel>], iteration_bounds = array<i64: 1>, scalar_prefetch = 0 : i64, scratch_operands = 0 : i64, tpu.core_type = #tpu.core_type<tc>, window_params = [{transform_indices = @transform_0, window_bounds = array<i64: 1, 8>}, {pipeline_mode = #tpu.pipeline_mode<synchronous>, transform_indices = @transform_1, window_bounds = array<i64: 4, 32, 16>}, {transform_indices = @transform_2, window_bounds = array<i64: 4, 16, 8>}, {transform_indices = @transform_3, window_bounds = array<i64: 32, 8>}, {transform_indices = @transform_4, window_bounds = array<i64: 1, 8>}]} {
    %c0 = arith.constant 0 : index
    %c0_0 = arith.constant 0 : index
    %0 = vector.load %arg4[%c0, %c0_0] : memref<32x8xf32, #tpu.memory_space<vmem>>, vector<32x8xf32>
    %c0_1 = arith.constant 0 : index
    %c0_2 = arith.constant 0 : index
    %c0_3 = arith.constant 0 : index
    %1 = vector.load %arg2[%c0_1, %c0_2, %c0_3] : memref<4x32x16xf32, #tpu.memory_space<vmem>>, vector<1x32x16xf32>
    %2 = vector.shape_cast %1 : vector<1x32x16xf32> to vector<32x16xf32>
    %c0_4 = arith.constant 0 : index
    %c0_5 = arith.constant 0 : index
    %c0_6 = arith.constant 0 : index
    %3 = vector.load %arg3[%c0_4, %c0_5, %c0_6] : memref<4x16x8xf32, #tpu.memory_space<vmem>>, vector<1x16x8xf32>
    %4 = vector.shape_cast %3 : vector<1x16x8xf32> to vector<16x8xf32>
    %cst = arith.constant dense<0.000000e+00> : vector<32x8xf32>
    %5 = tpu.matmul %2, %4, %cst {dimension_numbers = #tpu.dot_dimension_numbers<[1], [0], [0], [1], [0, 0, 1, 1], [], []>} : vector<32x16xf32>, vector<16x8xf32>, vector<32x8xf32> -> vector<32x8xf32>
    %6 = arith.subf %5, %0 : vector<32x8xf32>
    %7 = arith.mulf %6, %6 : vector<32x8xf32>
    %cst_7 = arith.constant dense<0.000000e+00> : vector<8xf32>
    %8 = vector.multi_reduction <add>, %7, %cst_7 [0] : vector<32x8xf32> to vector<8xf32>
    %9 = vector.shape_cast %8 : vector<8xf32> to vector<1x8xf32>
    %c1 = arith.constant 1 : index
    %c0_8 = arith.constant 0 : index
    %c0_9 = arith.constant 0 : index
    %10 = vector.load %arg2[%c1, %c0_8, %c0_9] : memref<4x32x16xf32, #tpu.memory_space<vmem>>, vector<1x32x16xf32>
    %11 = vector.shape_cast %10 : vector<1x32x16xf32> to vector<32x16xf32>
    %c1_10 = arith.constant 1 : index
    %c0_11 = arith.constant 0 : index
    %c0_12 = arith.constant 0 : index
    %12 = vector.load %arg3[%c1_10, %c0_11, %c0_12] : memref<4x16x8xf32, #tpu.memory_space<vmem>>, vector<1x16x8xf32>
    %13 = vector.shape_cast %12 : vector<1x16x8xf32> to vector<16x8xf32>
    %cst_13 = arith.constant dense<0.000000e+00> : vector<32x8xf32>
    %14 = tpu.matmul %11, %13, %cst_13 {dimension_numbers = #tpu.dot_dimension_numbers<[1], [0], [0], [1], [0, 0, 1, 1], [], []>} : vector<32x16xf32>, vector<16x8xf32>, vector<32x8xf32> -> vector<32x8xf32>
    %15 = arith.subf %14, %0 : vector<32x8xf32>
    %16 = arith.mulf %15, %15 : vector<32x8xf32>
    %cst_14 = arith.constant dense<0.000000e+00> : vector<8xf32>
    %17 = vector.multi_reduction <add>, %16, %cst_14 [0] : vector<32x8xf32> to vector<8xf32>
    %18 = vector.shape_cast %17 : vector<8xf32> to vector<1x8xf32>
    %c2 = arith.constant 2 : index
    %c0_15 = arith.constant 0 : index
    %c0_16 = arith.constant 0 : index
    %19 = vector.load %arg2[%c2, %c0_15, %c0_16] : memref<4x32x16xf32, #tpu.memory_space<vmem>>, vector<1x32x16xf32>
    %20 = vector.shape_cast %19 : vector<1x32x16xf32> to vector<32x16xf32>
    %c2_17 = arith.constant 2 : index
    %c0_18 = arith.constant 0 : index
    %c0_19 = arith.constant 0 : index
    %21 = vector.load %arg3[%c2_17, %c0_18, %c0_19] : memref<4x16x8xf32, #tpu.memory_space<vmem>>, vector<1x16x8xf32>
    %22 = vector.shape_cast %21 : vector<1x16x8xf32> to vector<16x8xf32>
    %cst_20 = arith.constant dense<0.000000e+00> : vector<32x8xf32>
    %23 = tpu.matmul %20, %22, %cst_20 {dimension_numbers = #tpu.dot_dimension_numbers<[1], [0], [0], [1], [0, 0, 1, 1], [], []>} : vector<32x16xf32>, vector<16x8xf32>, vector<32x8xf32> -> vector<32x8xf32>
    %24 = arith.subf %23, %0 : vector<32x8xf32>
    %25 = arith.mulf %24, %24 : vector<32x8xf32>
    %cst_21 = arith.constant dense<0.000000e+00> : vector<8xf32>
    %26 = vector.multi_reduction <add>, %25, %cst_21 [0] : vector<32x8xf32> to vector<8xf32>
    %27 = vector.shape_cast %26 : vector<8xf32> to vector<1x8xf32>
    %c3 = arith.constant 3 : index
    %c0_22 = arith.constant 0 : index
    %c0_23 = arith.constant 0 : index
    %28 = vector.load %arg2[%c3, %c0_22, %c0_23] : memref<4x32x16xf32, #tpu.memory_space<vmem>>, vector<1x32x16xf32>
    %29 = vector.shape_cast %28 : vector<1x32x16xf32> to vector<32x16xf32>
    %c3_24 = arith.constant 3 : index
    %c0_25 = arith.constant 0 : index
    %c0_26 = arith.constant 0 : index
    %30 = vector.load %arg3[%c3_24, %c0_25, %c0_26] : memref<4x16x8xf32, #tpu.memory_space<vmem>>, vector<1x16x8xf32>
    %31 = vector.shape_cast %30 : vector<1x16x8xf32> to vector<16x8xf32>
    %cst_27 = arith.constant dense<0.000000e+00> : vector<32x8xf32>
    %32 = tpu.matmul %29, %31, %cst_27 {dimension_numbers = #tpu.dot_dimension_numbers<[1], [0], [0], [1], [0, 0, 1, 1], [], []>} : vector<32x16xf32>, vector<16x8xf32>, vector<32x8xf32> -> vector<32x8xf32>
    %33 = arith.subf %32, %0 : vector<32x8xf32>
    %34 = arith.mulf %33, %33 : vector<32x8xf32>
    %cst_28 = arith.constant dense<0.000000e+00> : vector<8xf32>
    %35 = vector.multi_reduction <add>, %34, %cst_28 [0] : vector<32x8xf32> to vector<8xf32>
    %36 = vector.shape_cast %35 : vector<8xf32> to vector<1x8xf32>
    %37 = arith.addf %9, %18 : vector<1x8xf32>
    %38 = arith.addf %37, %27 : vector<1x8xf32>
    %39 = arith.addf %38, %36 : vector<1x8xf32>
    %cst_29 = arith.constant 9.99999993E-9 : f32
    %40 = vector.broadcast %cst_29 : f32 to vector<1x8xf32>
    %41 = arith.maximumf %39, %40 : vector<1x8xf32>
    %42 = tpu.reciprocal %41 {approx = true} : vector<1x8xf32> -> vector<1x8xf32>
    %43 = arith.subf %39, %9 : vector<1x8xf32>
    %44 = arith.mulf %43, %42 : vector<1x8xf32>
    %45 = arith.subf %39, %18 : vector<1x8xf32>
    %46 = arith.mulf %45, %42 : vector<1x8xf32>
    %47 = arith.subf %39, %27 : vector<1x8xf32>
    %48 = arith.mulf %47, %42 : vector<1x8xf32>
    %49 = arith.subf %39, %36 : vector<1x8xf32>
    %50 = arith.mulf %49, %42 : vector<1x8xf32>
    %51 = arith.maximumf %44, %46 : vector<1x8xf32>
    %52 = arith.maximumf %51, %48 : vector<1x8xf32>
    %53 = arith.maximumf %52, %50 : vector<1x8xf32>
    %54 = arith.subf %44, %53 : vector<1x8xf32>
    %55 = math.exp %54 : vector<1x8xf32>
    %56 = arith.subf %46, %53 : vector<1x8xf32>
    %57 = math.exp %56 : vector<1x8xf32>
    %58 = arith.subf %48, %53 : vector<1x8xf32>
    %59 = math.exp %58 : vector<1x8xf32>
    %60 = arith.subf %50, %53 : vector<1x8xf32>
    %61 = math.exp %60 : vector<1x8xf32>
    %62 = arith.addf %55, %57 : vector<1x8xf32>
    %63 = arith.addf %62, %59 : vector<1x8xf32>
    %64 = arith.addf %63, %61 : vector<1x8xf32>
    %65 = tpu.reciprocal %64 {approx = true} : vector<1x8xf32> -> vector<1x8xf32>
    %66 = arith.mulf %55, %65 : vector<1x8xf32>
    %67 = arith.mulf %57, %65 : vector<1x8xf32>
    %68 = arith.mulf %59, %65 : vector<1x8xf32>
    %69 = arith.mulf %61, %65 : vector<1x8xf32>
    %70 = math.exp %66 : vector<1x8xf32>
    %71 = math.exp %67 : vector<1x8xf32>
    %72 = arith.addf %70, %71 : vector<1x8xf32>
    %73 = math.exp %68 : vector<1x8xf32>
    %74 = arith.addf %72, %73 : vector<1x8xf32>
    %75 = math.exp %69 : vector<1x8xf32>
    %76 = arith.addf %74, %75 : vector<1x8xf32>
    %77 = math.log %76 : vector<1x8xf32>
    %c0_30 = arith.constant 0 : index
    %c0_31 = arith.constant 0 : index
    %78 = vector.load %arg1[%c0_30, %c0_31] : memref<1x8xi32, #tpu.memory_space<vmem>>, vector<1x8xi32>
    %cst_32 = arith.constant 0.000000e+00 : f32
    %79 = vector.broadcast %cst_32 : f32 to vector<1x8xf32>
    %c0_i32 = arith.constant 0 : i32
    %80 = vector.broadcast %c0_i32 : i32 to vector<1x8xi32>
    %81 = arith.cmpi eq, %78, %80 : vector<1x8xi32>
    %cst_33 = arith.constant 0.000000e+00 : f32
    %82 = vector.broadcast %cst_33 : f32 to vector<1x8xf32>
    %83 = arith.select %81, %66, %82 : vector<1x8xi1>, vector<1x8xf32>
    %84 = arith.addf %79, %83 : vector<1x8xf32>
    %c1_i32 = arith.constant 1 : i32
    %85 = vector.broadcast %c1_i32 : i32 to vector<1x8xi32>
    %86 = arith.cmpi eq, %78, %85 : vector<1x8xi32>
    %cst_34 = arith.constant 0.000000e+00 : f32
    %87 = vector.broadcast %cst_34 : f32 to vector<1x8xf32>
    %88 = arith.select %86, %67, %87 : vector<1x8xi1>, vector<1x8xf32>
    %89 = arith.addf %84, %88 : vector<1x8xf32>
    %c2_i32 = arith.constant 2 : i32
    %90 = vector.broadcast %c2_i32 : i32 to vector<1x8xi32>
    %91 = arith.cmpi eq, %78, %90 : vector<1x8xi32>
    %cst_35 = arith.constant 0.000000e+00 : f32
    %92 = vector.broadcast %cst_35 : f32 to vector<1x8xf32>
    %93 = arith.select %91, %68, %92 : vector<1x8xi1>, vector<1x8xf32>
    %94 = arith.addf %89, %93 : vector<1x8xf32>
    %c3_i32 = arith.constant 3 : i32
    %95 = vector.broadcast %c3_i32 : i32 to vector<1x8xi32>
    %96 = arith.cmpi eq, %78, %95 : vector<1x8xi32>
    %cst_36 = arith.constant 0.000000e+00 : f32
    %97 = vector.broadcast %cst_36 : f32 to vector<1x8xf32>
    %98 = arith.select %96, %69, %97 : vector<1x8xi1>, vector<1x8xf32>
    %99 = arith.addf %94, %98 : vector<1x8xf32>
    %100 = arith.subf %77, %99 : vector<1x8xf32>
    %c0_37 = arith.constant 0 : index
    %c0_38 = arith.constant 0 : index
    %101 = vector.load %arg5[%c0_37, %c0_38] : memref<1x8xf32, #tpu.memory_space<vmem>>, vector<1x8xf32>
    tpu.vector_store %arg5[%c0_37, %c0_38], %100 {strides = array<i32>} : memref<1x8xf32, #tpu.memory_space<vmem>>, vector<1x8xf32>,
    return
  }
  func.func @transform_0(%arg0: i32) -> (i32, i32) {
    %c0_i32 = arith.constant 0 : i32
    %c0_i32_0 = arith.constant 0 : i32
    return %c0_i32, %arg0 : i32, i32
  }
  func.func @transform_1(%arg0: i32) -> (i32, i32, i32) {
    %c0_i32 = arith.constant 0 : i32
    %c0_i32_0 = arith.constant 0 : i32
    %c0_i32_1 = arith.constant 0 : i32
    %c0_i32_2 = arith.constant 0 : i32
    return %c0_i32, %c0_i32_0, %c0_i32_1 : i32, i32, i32
  }
  func.func @transform_2(%arg0: i32) -> (i32, i32, i32) {
    %c0_i32 = arith.constant 0 : i32
    %c0_i32_0 = arith.constant 0 : i32
    %c0_i32_1 = arith.constant 0 : i32
    return %c0_i32, %c0_i32_0, %arg0 : i32, i32, i32
  }
  func.func @transform_3(%arg0: i32) -> (i32, i32) {
    %c0_i32 = arith.constant 0 : i32
    %c0_i32_0 = arith.constant 0 : i32
    return %c0_i32, %arg0 : i32, i32
  }
  func.func @transform_4(%arg0: i32) -> (i32, i32) {
    %c0_i32 = arith.constant 0 : i32
    %c0_i32_0 = arith.constant 0 : i32
    return %c0_i32, %arg0 : i32, i32
  }
}

</mosaic_0001>

<bundles_post_ra>
// kernel: tpu_custom_call.1
= control target key start
LH: loop header
LB: loop body
LE: loop exit
PB: predicated region body
PF: predicated region fallthrough
CT: control target
= control target key end

     0   :  { %vm28_vm0 = vcmask 130048   ;;  %s923_s0 = inlined_call_operand.vmem [shape: s32[1,8], index: 0, kind: input, shape index: {}]   ;;  %s924_s1 = inlined_call_operand.vmem [shape: f32[4,32,16], index: 1, kind: input, shape index: {}]   ;;  %s925_s2 = inlined_call_operand.vmem [shape: f32[4,16,8], index: 2, kind: input, shape index: {}]   ;;  %s926_s3 = inlined_call_operand.vmem [shape: f32[32,8], index: 3, kind: input, shape index: {}]   ;;  %s927_s4 = inlined_call_operand.hbm [shape: f32[1,8], index: 4, kind: output, shape index: {}]  }
   0x1   :  { %v26_v0 = vld [vmem:[%s925_s2] sm:$0xff]  ;;  %v27_v1 = vld [vmem:[%s925_s2 + $0x8] sm:$0xff]  ;;  %v613_v2 = vld [vmem:[%s925_s2 + $0x10] sm:$0xff] }
   0x2   :  { %v703_v3 = vpack.c.bf16 %v27_v1, %v26_v0  ;;  %v614_v4 = vld [vmem:[%s925_s2 + $0x18] sm:$0xff]  ;;  %v22_v5 = vld [vmem:[%s924_s1] sm:$0xff]  ;;  %v624_v9 = vld [vmem:[%s925_s2 + $0x28] sm:$0xff] }
   0x3   :  { %v609_v6 = vld [vmem:[%s924_s1 + $0x20] sm:$0xff]  ;;  %v707_v7 = vpack.c.bf16 %v614_v4, %v613_v2  ;;  %667 = vmatprep.mubr.msk.f32.mxu0 %vm28_vm0, %v22_v5  ;;  %v633_v10 = vld [vmem:[%s925_s2 + $0x30] sm:$0xff]  ;;  %v634_v11 = vld [vmem:[%s925_s2 + $0x38] sm:$0xff] }
   0x4   :  { %677 = vmatprep.mubr.msk.f32.mxu1 %vm28_vm0, %v609_v6  ;;  %v623_v8 = vld [vmem:[%s925_s2 + $0x20] sm:$0xff]  ;;  %704 = vmatprep.subr.bf16.mxu0 %v703_v3  ;;  %v23_v12 = vld [vmem:[%s924_s1 + $0x8] sm:$0xff]  ;;  %v715_v14 = vpack.c.bf16 %v634_v11, %v633_v10  ;;  %v24_v16 = vld [vmem:[%s924_s1 + $0x10] sm:$0xff] }
   0x5   :  { %708 = vmatprep.subr.bf16.mxu1 %v707_v7  ;;  %706 = vmatpush3.bf16.msra.mxu0 %v703_v3  ;;  %v711_v13 = vpack.c.bf16 %v624_v9, %v623_v8  ;;  %v610_v15 = vld [vmem:[%s924_s1 + $0x28] sm:$0xff]  ;;  %v611_v17 = vld [vmem:[%s924_s1 + $0x30] sm:$0xff]  ;;  %v25_v18 = vld [vmem:[%s924_s1 + $0x18] sm:$0xff] }
   0x6   :  { %710 = vmatpush3.bf16.msra.mxu1 %v707_v7 }
   0x7   :  { %712 = vmatprep.subr.bf16.mxu0 %v711_v13  ;;  %716 = vmatprep.subr.bf16.mxu1 %v715_v14 }
   0x8   :  { %668 = vmatmul.mubr.msk.f32.vlgmr.msra.gmra.mrb[0].mxu0 %vm28_vm0, %v23_v12 }
   0x9   :  { %678 = vmatmul.mubr.msk.f32.vlgmr.msra.gmra.mrb[0].mxu1 %vm28_vm0, %v610_v15  ;;  %714 = vmatpush3.bf16.msra.mxu0 %v711_v13 }
   0xa   :  { %9 = vsyncpa [#allocation3], 0  ;;  %670 = vmatprep.mubr.msk.f32.mxu0 %vm28_vm0, %v24_v16  ;;  %680 = vmatprep.mubr.msk.f32.mxu1 %vm28_vm0, %v611_v17  ;;  %v612_v19 = vld [vmem:[%s924_s1 + $0x38] sm:$0xff]  ;;  %v619_v20 = vld [vmem:[%s924_s1 + $0x40] sm:$0xff]  ;;  %vm134_vm1 = vcmask 64512   ;;  %vm589_vm6 = vcmask 57344  }
   0xb   :  { %718 = vmatpush3.bf16.msra.mxu1 %v715_v14  ;;  %v629_v21 = vld [vmem:[%s924_s1 + $0x60] sm:$0xff]  ;;  %v620_v22 = vld [vmem:[%s924_s1 + $0x48] sm:$0xff]  ;;  %v621_v24 = vld [vmem:[%s924_s1 + $0x50] sm:$0xff] }
   0xc   :  { %671 = vmatmul.mubr.msk.f32.gmra.mrb[2].mxu0 %vm28_vm0, %v25_v18  ;;  %v630_v23 = vld [vmem:[%s924_s1 + $0x68] sm:$0xff]  ;;  %v631_v25 = vld [vmem:[%s924_s1 + $0x70] sm:$0xff]  ;;  %v622_v26 = vld [vmem:[%s924_s1 + $0x58] sm:$0xff] }
   0xd   :  { %681 = vmatmul.mubr.msk.f32.gmra.mrb[2].mxu1 %vm28_vm0, %v612_v19  ;;  %687 = vmatprep.mubr.msk.f32.mxu0 %vm28_vm0, %v619_v20  ;;  %v632_v27 = vld [vmem:[%s924_s1 + $0x78] sm:$0xff]  ;;  %v19_v28 = vld [vmem:[%s926_s3 + $0x8] sm:$0xff]  ;;  %v18_v29 = vld [vmem:[%s926_s3] sm:$0xff] }
   0xe   :  { %697 = vmatprep.mubr.msk.f32.mxu1 %vm28_vm0, %v629_v21  ;;  %v21_v37 = vld [vmem:[%s926_s3 + $0x18] sm:$0xff]  ;;  %v20_v40 = vld [vmem:[%s926_s3 + $0x10] sm:$0xff] }
  0x10   :  { %688 = vmatmul.mubr.msk.f32.vlgmr.msra.gmra.mrb[4].mxu0 %vm28_vm0, %v620_v22 }
  0x11   :  { %698 = vmatmul.mubr.msk.f32.vlgmr.msra.gmra.mrb[4].mxu1 %vm28_vm0, %v630_v23  ;;  %690 = vmatprep.mubr.msk.f32.mxu0 %vm28_vm0, %v621_v24 }
  0x12   :  { %700 = vmatprep.mubr.msk.f32.mxu1 %vm28_vm0, %v631_v25 }
  0x14   :  { %691 = vmatmul.mubr.msk.f32.gmra.mrb[6].mxu0 %vm28_vm0, %v622_v26 }
  0x15   :  { %701 = vmatmul.mubr.msk.f32.gmra.mrb[6].mxu1 %vm28_vm0, %v632_v27 }
  0xdb   :  { %v669_v30 = vpop.f32.mrb[0].mxu0 }
  0xdc   :  { %v127_v31 = vsub.f32 %v669_v30, %v19_v28  ;;  %v107_v32 = vpop.f32.mrb[1].mxu0  ;;  %v679_v33 = vpop.f32.mrb[0].mxu1 }
  0xdd   :  { %v126_v34 = vsub.f32 %v107_v32, %v18_v29  ;;  %v254_v35 = vsub.f32 %v679_v33, %v19_v28  ;;  %v234_v36 = vpop.f32.mrb[1].mxu1 }
  0xde   :  { %v131_v38 = vmul.f32 %v127_v31, %v127_v31  ;;  %v253_v39 = vsub.f32 %v234_v36, %v18_v29 }
  0xdf   :  { %v130_v41 = vmul.f32 %v126_v34, %v126_v34  ;;  %v258_v42 = vmul.f32 %v254_v35, %v254_v35  ;;  %v672_v43 = vpop.f32.mrb[2].mxu0 }
  0xe0   :  { %v136_v44 = vsel %vm134_vm1, %v131_v38, 0.0  ;;  %v257_v45 = vmul.f32 %v253_v39, %v253_v39  ;;  %v129_v46 = vsub.f32 %v672_v43, %v21_v37  ;;  %v682_v47 = vpop.f32.mrb[2].mxu1  ;;  %v117_v48 = vpop.f32.mrb[3].mxu0 }
  0xe1   :  { %v135_v49 = vsel %vm134_vm1, %v130_v41, 0.0  ;;  %v262_v50 = vsel %vm134_vm1, %v258_v42, 0.0  ;;  %v256_v51 = vsub.f32 %v682_v47, %v21_v37  ;;  %v128_v52 = vsub.f32 %v117_v48, %v20_v40  ;;  %v244_v53 = vpop.f32.mrb[3].mxu1 }
  0xe2   :  { %v137_v54 = vadd.f32 %v136_v44, %v135_v49  ;;  %v261_v55 = vsel %vm134_vm1, %v257_v45, 0.0  ;;  %v255_v56 = vsub.f32 %v244_v53, %v20_v40  ;;  %v133_v58 = vmul.f32 %v129_v46, %v129_v46 }
  0xe3   :  { %v263_v57 = vadd.f32 %v262_v50, %v261_v55  ;;  %v260_v59 = vmul.f32 %v256_v51, %v256_v51  ;;  %v132_v60 = vmul.f32 %v128_v52, %v128_v52  ;;  %v689_v61 = vpop.f32.mrb[4].mxu0 }
  0xe4   :  { %v259_v62 = vmul.f32 %v255_v56, %v255_v56  ;;  %v380_v63 = vsub.f32 %v689_v61, %v19_v28  ;;  %v360_v0 = vpop.f32.mrb[5].mxu0  ;;  %v699_v1 = vpop.f32.mrb[4].mxu1  ;;  %v140_v11 = vsel %vm134_vm1, %v133_v58, 0.0 }
  0xe5   :  { %v266_v2 = vsel %vm134_vm1, %v260_v59, 0.0  ;;  %v138_v3 = vsel %vm134_vm1, %v132_v60, 0.0  ;;  %v379_v4 = vsub.f32 %v360_v0, %v18_v29  ;;  %v506_v5 = vsub.f32 %v699_v1, %v19_v28  ;;  %v486_v6 = vpop.f32.mrb[5].mxu1 }
  0xe6   :  { %v139_v7 = vadd.f32 %v138_v3, %v137_v54  ;;  %v264_v8 = vsel %vm134_vm1, %v259_v62, 0.0  ;;  %v384_v9 = vmul.f32 %v380_v63, %v380_v63  ;;  %v505_v10 = vsub.f32 %v486_v6, %v18_v29 }
  0xe7   :  { %v265_v12 = vadd.f32 %v264_v8, %v263_v57  ;;  %v383_v13 = vmul.f32 %v379_v4, %v379_v4  ;;  %v510_v14 = vmul.f32 %v506_v5, %v506_v5  ;;  %v692_v15 = vpop.f32.mrb[6].mxu0 }
  0xe8   :  { %v141_v16 = vadd.f32 %v140_v11, %v139_v7  ;;  %v388_v17 = vsel %vm134_vm1, %v384_v9, 0.0  ;;  %v509_v18 = vmul.f32 %v505_v10, %v505_v10  ;;  %v382_v19 = vsub.f32 %v692_v15, %v21_v37  ;;  %v702_v20 = vpop.f32.mrb[6].mxu1  ;;  %v370_v21 = vpop.f32.mrb[7].mxu0 }
  0xe9   :  { %v267_v22 = vadd.f32 %v266_v2, %v265_v12  ;;  %v387_v23 = vsel %vm134_vm1, %v383_v13, 0.0  ;;  %v514_v24 = vsel %vm134_vm1, %v510_v14, 0.0  ;;  %v508_v25 = vsub.f32 %v702_v20, %v21_v37  ;;  %v496_v26 = vpop.f32.mrb[7].mxu1 }
  0xea   :  { %v142_v27 = vrot.slane %v141_v16, 4  ;;  %v389_v28 = vadd.f32 %v388_v17, %v387_v23  ;;  %v513_v29 = vsel %vm134_vm1, %v509_v18, 0.0  ;;  %v381_v32 = vsub.f32 %v370_v21, %v20_v40 }
  0xeb   :  { %v268_v30 = vrot.slane %v267_v22, 4  ;;  %v515_v31 = vadd.f32 %v514_v24, %v513_v29  ;;  %v512_v34 = vmul.f32 %v508_v25, %v508_v25  ;;  %v507_v35 = vsub.f32 %v496_v26, %v20_v40 }
  0xec   :  { %v143_v33 = vadd.f32 %v142_v27, %v141_v16  ;;  %v386_v38 = vmul.f32 %v382_v19, %v382_v19  ;;  %v385_v39 = vmul.f32 %v381_v32, %v381_v32 }
  0xed   :  { %v269_v36 = vadd.f32 %v268_v30, %v267_v22  ;;  %v511_v42 = vmul.f32 %v507_v35, %v507_v35  ;;  %v518_v45 = vsel %vm134_vm1, %v512_v34, 0.0  ;;  %v575_v35 = vld [vmem:[%s923_s0] sm:$0x1]  ;;  %s766_s0 = smov [#allocation2]  }
  0xee   :  { %v144_v41 = vrot.slane %v143_v33, 2  ;;  %v390_v44 = vsel %vm134_vm1, %v385_v39, 0.0  ;;  %v392_v49 = vsel %vm134_vm1, %v386_v38, 0.0  ;;  %vm576_vm2 = vcmp.eq.s32.totalorder %v575_v35, 0  ;;  %s597_s17 = sshll.u32 %s766_s0, 4  ;;  %s598_s17 = int_to_ptr.vmem [resolvable:$true] %s597_s17 }
  0xef   :  { %v270_v43 = vrot.slane %v269_v36, 2  ;;  %v391_v46 = vadd.f32 %v390_v44, %v389_v28  ;;  %v516_v47 = vsel %vm134_vm1, %v511_v42, 0.0  ;;  %vm579_vm3 = vcmp.eq.s32.totalorder %v575_v35, 1  ;;  %s742_s18 = scalar_lea.vmem %s598_s17, 16  ;;  %s746_s19 = scalar_lea.vmem %s598_s17, 32 }
  0xf0   :  { %v145_v37 = vadd.f32 %v144_v41, %v143_v33  ;;  %v517_v50 = vadd.f32 %v516_v47, %v515_v31  ;;  %vm582_vm4 = vcmp.eq.s32.totalorder %v575_v35, 2  ;;  %vm585_vm5 = vcmp.eq.s32.totalorder %v575_v35, 3  ;;  %p743_p0 = scmp.ne.s32.totalorder %s598_s17, %s742_s18  ;;  %p747_p1 = scmp.lt.s32.totalorder %s598_s17, %s598_s17 }
  0xf1   :  { %v271_v48 = vadd.f32 %v270_v43, %v269_v36  ;;  %v393_v40 = vadd.f32 %v392_v49, %v391_v46  ;;  %p748_p2 = scmp.lt.s32.totalorder %s746_s19, %s742_s18 }
  0xf2   :  { %v146_v51 = vrot.slane %v145_v37, 1  ;;  %v519_v53 = vadd.f32 %v518_v45, %v517_v50 }
  0xf3   :  { %v272_v52 = vrot.slane %v271_v48, 1  ;;  %v394_v55 = vrot.slane %v393_v40, 4  ;;  %p749_p3 = por %p748_p2, %p747_p1 }
  0xf4   :  { %v147_v54 = vadd.f32 %v146_v51, %v145_v37  ;;  %v520_v57 = vrot.slane %v519_v53, 4 }
  0xf5   :  { %v273_v56 = vadd.f32 %v272_v52, %v271_v48  ;;  %v395_v58 = vadd.f32 %v394_v55, %v393_v40  ;;  %p750_p4 = pnand %p749_p3, %p743_p0 }
  0xf6   :  { %v521_v60 = vadd.f32 %v520_v57, %v519_v53 }
  0xf7   :  { %v526_v59 = vadd.f32 %v273_v56, %v147_v54  ;;  %v396_v61 = vrot.slane %v395_v58, 2 }
  0xf8   :  { %v522_v62 = vrot.slane %v521_v60, 2 }
  0xf9   :  { %v397_v63 = vadd.f32 %v396_v61, %v395_v58 }
  0xfa   :  { %v523_v0 = vadd.f32 %v522_v62, %v521_v60 }
  0xfb   :  { %v398_v1 = vrot.slane %v397_v63, 1 }
  0xfc   :  { %v524_v2 = vrot.slane %v523_v0, 1 }
  0xfd   :  { %v399_v3 = vadd.f32 %v398_v1, %v397_v63 }
  0xfe   :  { %v525_v5 = vadd.f32 %v524_v2, %v523_v0 }
  0xff   :  { %v527_v4 = vadd.f32 %v526_v59, %v399_v3 }
 0x101   :  { %v528_v6 = vadd.f32 %v527_v4, %v525_v5 }
 0x103   :  { %v529_v7 = vmax.f32 %v528_v6, 1e-08  ;;  %v531_v8 = vsub.f32 %v528_v6, %v147_v54  ;;  %v533_v9 = vsub.f32 %v528_v6, %v273_v56  ;;  %v535_v10 = vsub.f32 %v528_v6, %v399_v3 }
 0x104   :  { %v537_v11 = vsub.f32 %v528_v6, %v525_v5 }
 0x105   :  { %720 = vrcp.f32 %v529_v7 }
 0x10f   :  { %v721_v12 = vpop.eup %720 }
 0x110   :  { %v532_v13 = vmul.f32 %v721_v12, %v531_v8  ;;  %v534_v14 = vmul.f32 %v721_v12, %v533_v9  ;;  %v536_v15 = vmul.f32 %v721_v12, %v535_v10  ;;  %v538_v16 = vmul.f32 %v721_v12, %v537_v11 }
 0x112   :  { %v539_v17 = vmax.f32 %v532_v13, %v534_v14 }
 0x114   :  { %v540_v18 = vmax.f32 %v539_v17, %v536_v15 }
 0x116   :  { %v541_v19 = vmax.f32 %v540_v18, %v538_v16 }
 0x118   :  { %v551_v20 = vsub.f32 %v538_v16, %v541_v19  ;;  %v542_v21 = vsub.f32 %v532_v13, %v541_v19  ;;  %v545_v22 = vsub.f32 %v534_v14, %v541_v19  ;;  %v548_v23 = vsub.f32 %v536_v15, %v541_v19 }
 0x11a   :  { %v543_v24 = vmul.f32 1.442695, %v542_v21  ;;  %v546_v25 = vmul.f32 1.442695, %v545_v22  ;;  %v549_v26 = vmul.f32 1.442695, %v548_v23 }
 0x11b   :  { %v552_v27 = vmul.f32 1.442695, %v551_v20 }
 0x11c   :  { %722 = vpow2.f32 %v543_v24 }
 0x11d   :  { %724 = vpow2.f32 %v546_v25 }
 0x11e   :  { %726 = vpow2.f32 %v549_v26 }
 0x11f   :  { %728 = vpow2.f32 %v552_v27 }
 0x126   :  { %v723_v28 = vpop.eup %722 }
 0x127   :  { %v725_v29 = vpop.eup %724 }
 0x128   :  { %v554_v30 = vadd.f32 %v725_v29, %v723_v28  ;;  %v727_v31 = vpop.eup %726 }
 0x129   :  { %v729_v33 = vpop.eup %728 }
 0x12a   :  { %v555_v32 = vadd.f32 %v727_v31, %v554_v30 }
 0x12c   :  { %v556_v34 = vadd.f32 %v729_v33, %v555_v32 }
 0x12e   :  { %730 = vrcp.f32 %v556_v34 }
 0x138   :  { %v731_v36 = vpop.eup %730 }
 0x139   :  { %v558_v38 = vmul.f32 %v731_v36, %v723_v28  ;;  %v559_v39 = vmul.f32 %v731_v36, %v725_v29  ;;  %v560_v41 = vmul.f32 %v731_v36, %v727_v31  ;;  %v561_v42 = vmul.f32 %v731_v36, %v729_v33 }
 0x13b   :  { %v562_v43 = vmul.f32 1.442695, %v558_v38  ;;  %v564_v44 = vmul.f32 1.442695, %v559_v39  ;;  %v567_v37 = vmul.f32 1.442695, %v560_v41 }
 0x13c   :  { %v577_v45 = vsel %vm576_vm2, %v558_v38, 0.0  ;;  %v580_v46 = vsel %vm579_vm3, %v559_v39, 0.0  ;;  %v570_v48 = vmul.f32 1.442695, %v561_v42  ;;  %v583_v49 = vsel %vm582_vm4, %v560_v41, 0.0 }
 0x13d   :  { %732 = vpow2.f32 %v562_v43  ;;  %v581_v47 = vadd.f32 %v580_v46, %v577_v45  ;;  %v586_v51 = vsel %vm585_vm5, %v561_v42, 0.0 }
 0x13e   :  { %734 = vpow2.f32 %v564_v44 }
 0x13f   :  { %v584_v50 = vadd.f32 %v583_v49, %v581_v47  ;;  %736 = vpow2.f32 %v567_v37 }
 0x140   :  { %738 = vpow2.f32 %v570_v48 }
 0x141   :  { %v587_v40 = vadd.f32 %v586_v51, %v584_v50 }
 0x147   :  { %v733_v52 = vpop.eup %732 }
 0x148   :  { %v735_v53 = vpop.eup %734 }
 0x149   :  { %v566_v54 = vadd.f32 %v735_v53, %v733_v52  ;;  %v737_v55 = vpop.eup %736 }
 0x14a   :  { %v739_v57 = vpop.eup %738 }
 0x14b   :  { %v569_v56 = vadd.f32 %v737_v55, %v566_v54 }
 0x14d   :  { %v572_v58 = vadd.f32 %v739_v57, %v569_v56 }
 0x14f   :  { %740 = vlog2.f32 %v572_v58 }
 0x159   :  { %v741_v59 = vpop.eup %740 }
 0x15a   :  { %v574_v60 = vmul.f32 0.6931472, %v741_v59 }
 0x15c   :  { %v588_v61 = vsub.f32 %v574_v60, %v587_v40 }
 0x15e   :  { %590 = vst.msk [vmem:[#allocation2] sm:$0x1] %vm589_vm6, %v588_v61 }
 0x15f   :  { %753 = shalt.err (!%p750_p4)
}
 0x160   :  { %s754_s22 = scalar_lea.hbm %s927_s4, 16 }
 0x161   :  { %p755_p5 = scmp.ne.s32.totalorder %s927_s4, %s754_s22  ;;  %p758_p6 = scmp.lt.u32.totalorder %s754_s22, %s927_s4 }
 0x163   :  { %p760_p7 = pnand %p758_p6, %p755_p5 }
 0x165   :  { %763 = shalt.err (!%p760_p7)
}
 0x166   :  { %600 = dma.vmem_to_hbm [thread:$0]  %s598_s17, 16, %s927_s4, [#allocation3]  }
 0x167   :  { %764 = dma.done.wait [#allocation3], 16  }
 0x168   :  { %765 = vsyncadd [#allocation3], 4294967280 }
 0x169   :  { %604 = vsyncpa [#allocation3], 1 }

</bundles_post_ra>
